<compile_context>
chip_gen: v5e
topology: v5e:2x2
jax: 0.10.0
libtpu: 0.0.40
codegen_flags: <defaults>
</compile_context>

<pallas_src>
import functools

import jax
import jax.numpy as jnp
from jax.experimental import pallas as pl
from jax.experimental.pallas import tpu as pltpu


def layernorm_kernel(x_ref, a_ref, b_ref, o_ref, *, eps):
    # x_ref: (tile_rows, H); a_ref/b_ref: (1, H).  No feature padding, so the
    # in-kernel feature count is exactly H.
    x = x_ref[...].astype(jnp.float32)
    a = a_ref[...].astype(jnp.float32)
    b = b_ref[...].astype(jnp.float32)

    h = x.shape[-1]
    mean = jnp.mean(x, axis=-1, keepdims=True)
    xc = x - mean
    # Two-pass unbiased variance: matches the reference op-for-op and avoids the
    # catastrophic cancellation of the fused (s2 - n*mean^2) form.
    # NOTE: h == 1 divides by zero, exactly like the reference module.
    var = jnp.sum(xc * xc, axis=-1, keepdims=True) / (h - 1)
    std = jnp.sqrt(var + eps)

    # Reference semantics: eps AND the per-feature bias b go into the denominator.
    d = std + eps + b                      # (tile, 1) + (1, H) -> (tile, H)
    o_ref[...] = (a * xc / d).astype(o_ref.dtype)


def _round_up(v, m):
    return ((v + m - 1) // m) * m


def _cdiv(a, b):
    return -(-a // b)


def _tpu_generation_defaults():
    """Best-effort generation-aware sizing; safe-everywhere defaults on failure."""
    num_cores = 1
    vmem_bytes = 64 * 1024 * 1024          # conservative: v7x per-TC VMEM
    try:
        info = pltpu.get_tpu_info()
        vmem_bytes = int(getattr(info, "vmem_capacity_bytes", vmem_bytes))
        for name in ("num_cores", "core_count", "num_tensorcores", "tensorcore_count"):
            v = getattr(info, name, None)
            if v:
                num_cores = int(v)
                break
    except Exception:
        pass
    # VMEM working set ~= (x block + out block + ~2x f32 temps) double-buffered
    # => budget the input block at roughly 1/12 of the VMEM limit.
    vmem_limit = min(int(vmem_bytes * 3 // 4), 96 * 1024 * 1024)
    target_block = max(2 * 1024 * 1024, min(vmem_limit // 12, 8 * 1024 * 1024))
    return num_cores, target_block, vmem_limit


def _pick_tile_rows(n_rows, row_bytes, sublane, num_cores, target_block_bytes):
    """Largest sublane-aligned row tile whose x block is ~target_block_bytes.
    Only when multiple TensorCores exist do we shrink it so the grid-step count
    is a multiple of the core count (balanced megacore sharding)."""
    t = (target_block_bytes // max(row_bytes, 1)) // sublane * sublane
    t = max(t, sublane)
    t = min(t, _round_up(n_rows, sublane))
    if num_cores > 1:
        steps = _round_up(max(_cdiv(n_rows, t), num_cores), num_cores)
        t = min(t, max(sublane, _round_up(_cdiv(n_rows, steps), sublane)))
    return t


def layer_norm(x, a, b, eps=1e-6):
    """x: (..., H); a, b: (H,). Returns same shape/dtype as x."""
    orig_shape = x.shape
    H = orig_shape[-1]
    x2 = x.reshape(-1, H)
    R = x2.shape[0]

    itemsize = jnp.dtype(x.dtype).itemsize
    sublane = 8 if itemsize >= 4 else (16 if itemsize == 2 else 32)

    num_cores, target_block_bytes, vmem_limit = _tpu_generation_defaults()
    tile_rows = _pick_tile_rows(R, H * itemsize, sublane, num_cores, target_block_bytes)
    grid = (pl.cdiv(R, tile_rows),)

    a2 = a.reshape(1, H)
    b2 = b.reshape(1, H)

    kernel = functools.partial(layernorm_kernel, eps=eps)

    out = pl.pallas_call(
        kernel,
        out_shape=jax.ShapeDtypeStruct((R, H), x.dtype),
        grid=grid,
        in_specs=[
            # Last block dim equals the full array dim H -> exempt from the
            # 128-divisibility rule; row dim is sublane-aligned and the ragged
            # final block (if any) is handled by Pallas's OOB masking.
            pl.BlockSpec((tile_rows, H), lambda i: (i, 0)),
            pl.BlockSpec((1, H), lambda i: (0, 0)),
            pl.BlockSpec((1, H), lambda i: (0, 0)),
        ],
        out_specs=pl.BlockSpec((tile_rows, H), lambda i: (i, 0)),
        compiler_params=pltpu.CompilerParams(
            dimension_semantics=("parallel",),
            vmem_limit_bytes=vmem_limit,
        ),
    )(x2, a2, b2)

    return out.reshape(orig_shape)


def layer_norm_ref(x, a, b, eps=1e-6):
    # Pure-JAX reference mirroring the PyTorch forward exactly.
    xf = x.astype(jnp.float32)
    mean = jnp.mean(xf, axis=-1, keepdims=True)
    std = jnp.sqrt(
        jnp.sum((xf - mean) ** 2, axis=-1, keepdims=True) / (x.shape[-1] - 1) + eps)
    d = std + eps + b
    return (a * (xf - mean) / d).astype(x.dtype)


if __name__ == "__main__":
    key = jax.random.PRNGKey(0)
    k0, k1, k2, k3 = jax.random.split(key, 4)

    # Small shape implied by the module: (batch, seq, hidden), norm over hidden.
    batch, seq, hidden = 2, 8, 32
    x = jax.random.normal(k0, (batch, seq, hidden), dtype=jnp.float32)
    a = jnp.ones((hidden,), dtype=jnp.float32)   # nn.Parameter(torch.ones(num_features))
    b = jnp.zeros((hidden,), dtype=jnp.float32)  # nn.Parameter(torch.zeros(num_features))

    out = jax.block_until_ready(layer_norm(x, a, b, eps=1e-6))
    ref = layer_norm_ref(x, a, b, eps=1e-6)
    assert out.shape == x.shape and out.dtype == x.dtype
    assert jnp.allclose(out, ref, atol=1e-5, rtol=1e-5), "mismatch vs reference (small H)"

    # Second check: lane-dense H, non-trivial a/b, rows not a multiple of 8,
    # and a non-zero mean offset to exercise the two-pass variance path.
    H2 = 256
    x2 = 3.0 + jax.random.normal(k1, (3, 14, H2), dtype=jnp.float32)
    a2 = 1.0 + 0.1 * jax.random.normal(k2, (H2,), dtype=jnp.float32)
    b2 = 0.05 * jax.random.normal(k3, (H2,), dtype=jnp.float32)
    out2 = jax.block_until_ready(layer_norm(x2, a2, b2, eps=1e-6))
    ref2 = layer_norm_ref(x2, a2, b2, eps=1e-6)
    assert jnp.allclose(out2, ref2, atol=1e-5, rtol=1e-5), "mismatch vs reference (ragged rows)"

    print("KERNEL_OK")
</pallas_src>

<mosaic_0001>
module attributes {stable_mosaic.version = 11 : i64} {
  func.func @layernorm_kernel(%arg0: i32, %arg1: memref<16x32xf32, #tpu.memory_space<vmem>>, %arg2: memref<1x32xf32, #tpu.memory_space<vmem>>, %arg3: memref<1x32xf32, #tpu.memory_space<vmem>>, %arg4: memref<16x32xf32, #tpu.memory_space<vmem>>) attributes {dimension_semantics = [#tpu.dimension_semantics<parallel>], iteration_bounds = array<i64: 1>, scalar_prefetch = 0 : i64, scratch_operands = 0 : i64, tpu.core_type = #tpu.core_type<tc>, window_params = [{transform_indices = @transform_0, window_bounds = array<i64: 16, 32>}, {pipeline_mode = #tpu.pipeline_mode<synchronous>, transform_indices = @transform_1, window_bounds = array<i64: 1, 32>}, {pipeline_mode = #tpu.pipeline_mode<synchronous>, transform_indices = @transform_2, window_bounds = array<i64: 1, 32>}, {transform_indices = @transform_3, window_bounds = array<i64: 16, 32>}]} {
    %c0 = arith.constant 0 : index
    %c0_0 = arith.constant 0 : index
    %0 = vector.load %arg1[%c0, %c0_0] : memref<16x32xf32, #tpu.memory_space<vmem>>, vector<16x32xf32>
    %c0_1 = arith.constant 0 : index
    %c0_2 = arith.constant 0 : index
    %1 = vector.load %arg2[%c0_1, %c0_2] : memref<1x32xf32, #tpu.memory_space<vmem>>, vector<1x32xf32>
    %c0_3 = arith.constant 0 : index
    %c0_4 = arith.constant 0 : index
    %2 = vector.load %arg3[%c0_3, %c0_4] : memref<1x32xf32, #tpu.memory_space<vmem>>, vector<1x32xf32>
    %cst = arith.constant dense<0.000000e+00> : vector<16xf32>
    %3 = vector.multi_reduction <add>, %0, %cst [1] : vector<16x32xf32> to vector<16xf32>
    %4 = vector.shape_cast %3 : vector<16xf32> to vector<16x1xf32>
    %cst_5 = arith.constant 3.200000e+01 : f32
    %5 = vector.broadcast %cst_5 : f32 to vector<16x1xf32>
    %6 = arith.divf %4, %5 : vector<16x1xf32>
    %7 = vector.broadcast %6 : vector<16x1xf32> to vector<16x32xf32>
    %8 = arith.subf %0, %7 : vector<16x32xf32>
    %9 = arith.mulf %8, %8 : vector<16x32xf32>
    %cst_6 = arith.constant dense<0.000000e+00> : vector<16xf32>
    %10 = vector.multi_reduction <add>, %9, %cst_6 [1] : vector<16x32xf32> to vector<16xf32>
    %11 = vector.shape_cast %10 : vector<16xf32> to vector<16x1xf32>
    %cst_7 = arith.constant 3.100000e+01 : f32
    %12 = vector.broadcast %cst_7 : f32 to vector<16x1xf32>
    %13 = arith.divf %11, %12 : vector<16x1xf32>
    %cst_8 = arith.constant 9.99999997E-7 : f32
    %14 = vector.broadcast %cst_8 : f32 to vector<16x1xf32>
    %15 = arith.addf %13, %14 : vector<16x1xf32>
    %16 = math.sqrt %15 : vector<16x1xf32>
    %cst_9 = arith.constant 9.99999997E-7 : f32
    %17 = vector.broadcast %cst_9 : f32 to vector<16x1xf32>
    %18 = arith.addf %16, %17 : vector<16x1xf32>
    %19 = vector.broadcast %18 : vector<16x1xf32> to vector<16x32xf32>
    %20 = vector.broadcast %2 : vector<1x32xf32> to vector<16x32xf32>
    %21 = arith.addf %19, %20 : vector<16x32xf32>
    %22 = vector.broadcast %1 : vector<1x32xf32> to vector<16x32xf32>
    %23 = arith.mulf %22, %8 : vector<16x32xf32>
    %24 = arith.divf %23, %21 : vector<16x32xf32>
    %c0_10 = arith.constant 0 : index
    %c0_11 = arith.constant 0 : index
    %25 = vector.load %arg4[%c0_10, %c0_11] : memref<16x32xf32, #tpu.memory_space<vmem>>, vector<16x32xf32>
    tpu.vector_store %arg4[%c0_10, %c0_11], %24 {strides = array<i32>} : memref<16x32xf32, #tpu.memory_space<vmem>>, vector<16x32xf32>,
    return
  }
  func.func @transform_0(%arg0: i32) -> (i32, i32) {
    %c0_i32 = arith.constant 0 : i32
    %c0_i32_0 = arith.constant 0 : i32
    return %arg0, %c0_i32 : i32, i32
  }
  func.func @transform_1(%arg0: i32) -> (i32, i32) {
    %c0_i32 = arith.constant 0 : i32
    %c0_i32_0 = arith.constant 0 : i32
    %c0_i32_1 = arith.constant 0 : i32
    return %c0_i32, %c0_i32_0 : i32, i32
  }
  func.func @transform_2(%arg0: i32) -> (i32, i32) {
    %c0_i32 = arith.constant 0 : i32
    %c0_i32_0 = arith.constant 0 : i32
    %c0_i32_1 = arith.constant 0 : i32
    return %c0_i32, %c0_i32_0 : i32, i32
  }
  func.func @transform_3(%arg0: i32) -> (i32, i32) {
    %c0_i32 = arith.constant 0 : i32
    %c0_i32_0 = arith.constant 0 : i32
    return %arg0, %c0_i32 : i32, i32
  }
}

</mosaic_0001>

<bundles_post_ra>
// kernel: tpu_custom_call.1
= control target key start
LH: loop header
LB: loop body
LE: loop exit
PB: predicated region body
PF: predicated region fallthrough
CT: control target
= control target key end

     0   :  { %8 = vsyncpa [#allocation3], 0  ;;  %s334_s0 = inlined_call_operand.hbm [shape: f32[16,32], index: 0, kind: input, shape index: {}]   ;;  %s335_s1 = inlined_call_operand.hbm [shape: f32[1,32], index: 1, kind: input, shape index: {}]   ;;  %s336_s2 = inlined_call_operand.vmem [shape: f32[1,32], index: 2, kind: input, shape index: {}]   ;;  %s337_s3 = inlined_call_operand.hbm [shape: f32[16,32], index: 3, kind: output, shape index: {}]  }
   0x1   :  { %9 = vsyncpa [#allocation6], 0 }
   0x2   :  { %10 = vsyncpa [#allocation4], 0  ;;  %s15_s14 = sshll.u32 %s334_s0, 4  ;;  %s273_s15 = smov [#allocation2]   ;;  %s16_s14 = int_to_ptr.hbm [resolvable:$true] %s15_s14 }
   0x3   :  { %s17_s16 = sshll.u32 %s273_s15, 4  ;;  %s29_s19 = sshll.u32 %s335_s1, 4  ;;  %s18_s16 = int_to_ptr.vmem [resolvable:$true] %s17_s16  ;;  %s30_s19 = int_to_ptr.hbm [resolvable:$true] %s29_s19 }
   0x4   :  { %s274_s20 = smov 128   ;;  %s275_s21 = smov 8  }
   0x5   :  { %23 = dma.hbm_to_vmem [thread:$0]  %s16_s14, 256, %s18_s16, [#allocation3], %s274_s20, %s274_s20, %s275_s21  }
   0x6   :  { %s276_s22 = smov [#allocation5]  }
   0x7   :  { %s31_s23 = sshll.u32 %s276_s22, 4  ;;  %s32_s23 = int_to_ptr.vmem [resolvable:$true] %s31_s23 }
   0x8   :  { %34 = dma.hbm_to_vmem [thread:$0]  %s30_s19, 16, %s32_s23, [#allocation6]  }
   0x9   :  { %267 = dma.done.wait [#allocation3], 256  }
   0xa   :  { %268 = vsyncadd [#allocation3], 4294967040 }
   0xb   :  { %269 = dma.done.wait [#allocation6], 16  }
   0xc   :  { %270 = vsyncadd [#allocation6], 4294967280  ;;  %vm49_vm0 = vcmask 261120   ;;  %v45_v0 = vld [vmem:[#allocation2] sm:$0xff]  ;;  %v46_v2 = vld [vmem:[#allocation2 + $0x8] sm:$0xff]  ;;  %v277_v4 = vmov 32.0  }
   0xd   :  { %v50_v1 = vsel %vm49_vm0, %v45_v0, 0.0  ;;  %v53_v3 = vsel %vm49_vm0, %v46_v2, 0.0  ;;  %183 = vrcp.f32 %v277_v4  ;;  %v278_v21 = vmov 31.0   ;;  %v182_v47 = vld [vmem:[%s336_s2] ss:$0 sm:$0xff]  ;;  %s279_s2 = smov [#allocation7]  }
   0xe   :  { %51 = vadd.xlane.f32.xlu0 %v50_v1  ;;  %185 = vrcp.f32 %v278_v21  ;;  %v181_v63 = vld [vmem:[#allocation5] ss:$0 sm:$0xff]  ;;  %s158_s24 = sshll.u32 %s279_s2, 4  ;;  %s160_s27 = sshll.u32 %s337_s3, 4  ;;  %s159_s24 = int_to_ptr.vmem [resolvable:$true] %s158_s24  ;;  %s161_s27 = int_to_ptr.hbm [resolvable:$true] %s160_s27 }
  0x13   :  { %v184_v5 = vpop.eup %183 }
  0x14   :  { %v57_v6 = vmul.f32 32.0, %v184_v5  ;;  %vm61_vm1 = vweird.f32 %v184_v5  ;;  %v186_v22 = vpop.eup %185 }
  0x15   :  { %v76_v23 = vmul.f32 31.0, %v186_v22  ;;  %vm80_vm2 = vweird.f32 %v186_v22 }
  0x16   :  { %54 = vadd.xlane.f32.xlu0 %v53_v3  ;;  %v58_v7 = vsub.f32 1.0, %v57_v6 }
  0x17   :  { %v77_v24 = vsub.f32 1.0, %v76_v23 }
  0x18   :  { %v59_v8 = vmul.f32 %v184_v5, %v58_v7 }
  0x19   :  { %v78_v25 = vmul.f32 %v186_v22, %v77_v24 }
  0x1a   :  { %v60_v9 = vadd.f32 %v184_v5, %v59_v8 }
  0x1b   :  { %v79_v26 = vadd.f32 %v186_v22, %v78_v25 }
  0x1c   :  { %v62_v10 = vsel %vm61_vm1, %v184_v5, %v60_v9 }
  0x1d   :  { %v81_v27 = vsel %vm80_vm2, %v186_v22, %v79_v26 }
  0x81   :  { %v52_v11 = vpop.xlane.xlu0 %51 }
  0x82   :  { %v63_v12 = vmul.f32 %v62_v10, %v52_v11 }
  0x84   :  { %v311_v13 = vsub.f32 %v45_v0, %v63_v12 }
  0x86   :  { %v67_v14 = vmul.f32 %v311_v13, %v311_v13  ;;  %v120_v5 = vmul.f32 %v181_v63, %v311_v13 }
  0x88   :  { %v69_v15 = vsel %vm49_vm0, %v67_v14, 0.0 }
  0x89   :  { %70 = vadd.xlane.f32.xlu1 %v69_v15  ;;  %v55_v16 = vpop.xlane.xlu0 %54 }
  0x8a   :  { %v64_v17 = vmul.f32 %v62_v10, %v55_v16 }
  0x8c   :  { %v316_v18 = vsub.f32 %v46_v2, %v64_v17 }
  0x8e   :  { %v68_v19 = vmul.f32 %v316_v18, %v316_v18  ;;  %v121_v13 = vmul.f32 %v181_v63, %v316_v18 }
  0x90   :  { %v72_v20 = vsel %vm49_vm0, %v68_v19, 0.0 }
  0x91   :  { %73 = vadd.xlane.f32.xlu1 %v72_v20 }
  0xfc   :  { %v71_v28 = vpop.xlane.xlu1 %70 }
  0xfd   :  { %v82_v29 = vmul.f32 %v81_v27, %v71_v28 }
  0xff   :  { %v84_v30 = vadd.f32 1e-06, %v82_v29 }
 0x101   :  { %187 = vrsqrt.f32 %v84_v30  ;;  %vm93_vm3 = vcmp.eq.f32.partialorder %v84_v30, inf  ;;  %v96_v44 = vand.u32 2147483648, %v84_v30  ;;  %vm95_vm4 = vcmp.eq.f32.partialorder %v84_v30, 0.0 }
 0x104   :  { %v74_v31 = vpop.xlane.xlu1 %73 }
 0x105   :  { %v83_v32 = vmul.f32 %v81_v27, %v74_v31 }
 0x107   :  { %v188_v33 = vpop.eup %187  ;;  %v85_v34 = vadd.f32 1e-06, %v83_v32 }
 0x108   :  { %v87_v35 = vmul.f32 %v188_v33, %v84_v30 }
 0x109   :  { %189 = vrsqrt.f32 %v85_v34  ;;  %vm105_vm5 = vcmp.eq.f32.partialorder %v85_v34, inf  ;;  %v108_v54 = vand.u32 2147483648, %v85_v34  ;;  %vm107_vm6 = vcmp.eq.f32.partialorder %v85_v34, 0.0 }
 0x10a   :  { %v88_v36 = vmul.f32 %v188_v33, %v87_v35 }
 0x10c   :  { %v89_v37 = vmul.f32 0.5, %v88_v36 }
 0x10e   :  { %v90_v38 = vsub.f32 1.5, %v89_v37 }
 0x10f   :  { %v190_v39 = vpop.eup %189 }
 0x110   :  { %v91_v40 = vmul.f32 %v188_v33, %v90_v38  ;;  %v99_v41 = vmul.f32 %v190_v39, %v85_v34 }
 0x112   :  { %v92_v42 = vmul.f32 %v91_v40, %v84_v30  ;;  %v100_v43 = vmul.f32 %v190_v39, %v99_v41 }
 0x114   :  { %v94_v45 = vsel %vm93_vm3, %v84_v30, %v92_v42  ;;  %v101_v46 = vmul.f32 0.5, %v100_v43 }
 0x115   :  { %v97_v48 = vsel %vm95_vm4, %v96_v44, %v94_v45 }
 0x116   :  { %v110_v49 = vadd.f32 1e-06, %v97_v48  ;;  %v102_v50 = vsub.f32 1.5, %v101_v46 }
 0x118   :  { %v103_v51 = vmul.f32 %v190_v39, %v102_v50  ;;  %v115_v52 = vadd.f32 %v182_v47, %v110_v49 }
 0x11a   :  { %v104_v53 = vmul.f32 %v103_v51, %v85_v34  ;;  %191 = vrcp.f32 %v115_v52  ;;  %v133_v62 = vand.u32 2147483648, %v115_v52  ;;  %v131_v1 = vand.u32 2147483647, %v115_v52 }
 0x11b   :  { %vm127_vm8 = vweird.f32 %v115_v52 }
 0x11c   :  { %v106_v55 = vsel %vm105_vm5, %v85_v34, %v104_v53  ;;  %v134_v4 = vor.u32 1.1754944e-38, %v133_v62  ;;  %vm132_vm10 = vcmp.eq.f32.partialorder %v131_v1, 8.507059e+37 }
 0x11d   :  { %v109_v56 = vsel %vm107_vm6, %v108_v54, %v106_v55 }
 0x11e   :  { %v111_v57 = vadd.f32 1e-06, %v109_v56 }
 0x120   :  { %v192_v58 = vpop.eup %191  ;;  %v116_v59 = vadd.f32 %v182_v47, %v111_v57 }
 0x121   :  { %v123_v60 = vmul.f32 %v192_v58, %v115_v52  ;;  %vm128_vm7 = vweird.f32 %v192_v58 }
 0x122   :  { %193 = vrcp.f32 %v116_v59  ;;  %vm129_vm9 = vmor %vm127_vm8, %vm128_vm7  ;;  %v148_v11 = vand.u32 2147483648, %v116_v59  ;;  %v146_v14 = vand.u32 2147483647, %v116_v59  ;;  %vm142_vm12 = vweird.f32 %v116_v59 }
 0x123   :  { %v124_v61 = vsub.f32 1.0, %v123_v60 }
 0x124   :  { %v149_v16 = vor.u32 1.1754944e-38, %v148_v11  ;;  %vm147_vm14 = vcmp.eq.f32.partialorder %v146_v14, 8.507059e+37 }
 0x125   :  { %v125_v0 = vmul.f32 %v192_v58, %v124_v61 }
 0x127   :  { %v126_v2 = vadd.f32 %v192_v58, %v125_v0 }
 0x128   :  { %v194_v3 = vpop.eup %193 }
 0x129   :  { %v130_v6 = vsel %vm129_vm9, %v192_v58, %v126_v2  ;;  %v138_v7 = vmul.f32 %v194_v3, %v116_v59  ;;  %vm143_vm11 = vweird.f32 %v194_v3 }
 0x12a   :  { %v135_v8 = vsel %vm132_vm10, %v134_v4, %v130_v6  ;;  %vm144_vm13 = vmor %vm142_vm12, %vm143_vm11 }
 0x12b   :  { %v136_v9 = vmul.f32 %v135_v8, %v120_v5  ;;  %v139_v10 = vsub.f32 1.0, %v138_v7 }
 0x12d   :  { %v140_v12 = vmul.f32 %v194_v3, %v139_v10  ;;  %152 = vst.msk [vmem:[#allocation7] sm:$0xff] %vm49_vm0, %v136_v9 }
 0x12f   :  { %v141_v15 = vadd.f32 %v194_v3, %v140_v12 }
 0x131   :  { %v145_v17 = vsel %vm144_vm13, %v194_v3, %v141_v15 }
 0x132   :  { %v150_v19 = vsel %vm147_vm14, %v149_v16, %v145_v17 }
 0x133   :  { %v151_v20 = vmul.f32 %v150_v19, %v121_v13 }
 0x135   :  { %153 = vst.msk [vmem:[#allocation7 + $0x8] sm:$0xff] %vm49_vm0, %v151_v20 }
 0x136   :  { %166 = dma.vmem_to_hbm [thread:$0]  %s159_s24, 256, %s161_s27, [#allocation4], %s274_s20, %s274_s20, %s275_s21  }
 0x137   :  { %271 = dma.done.wait [#allocation4], 256  }
 0x138   :  { %272 = vsyncadd [#allocation4], 4294967040 }
 0x139   :  { %171 = vsyncpa [#allocation3], 1 }
 0x13a   :  { %172 = vsyncpa [#allocation6], 1 }
 0x13b   :  { %173 = vsyncpa [#allocation4], 1 }

</bundles_post_ra>
